<compile_context>
chip_gen: v5e
topology: v5e:2x2
jax: 0.10.0
libtpu: 0.0.40
codegen_flags: <defaults>
</compile_context>

<pallas_src>
import functools

import jax
import jax.numpy as jnp
from jax.experimental import pallas as pl
from jax.experimental.pallas import tpu as pltpu


_LANE = 128
_MAX_LANE = 8192            # upper bound on the lane-dense last dim
_MIN_SPLIT_BYTES = 1 << 20  # only split across TensorCores when work is non-trivial


def _square_relu_capped_kernel(x_ref, o_ref, *, cap_value):
    x = x_ref[...]
    r = jnp.maximum(x, 0)  # scalar splat; avoids a full-block zeros broadcast
    o_ref[...] = jnp.minimum(r * r, jnp.asarray(cap_value, dtype=x.dtype))


def _sublane(itemsize):
    # Native sublane packing: 8 rows (4-byte), 16 (2-byte), 32 (1-byte) dtypes.
    return {4: 8, 2: 16, 1: 32}.get(itemsize, 8)


def _round_up(a, m):
    return ((a + m - 1) // m) * m


def _cdiv(a, b):
    return -(-a // b)


def _pick_lane_dim(n, sub):
    """Largest L (multiple of 128, <= _MAX_LANE) dividing n.

    Prefers an L whose row count is a multiple of the sublane packing (or small
    enough to be a single full-extent block). Returns None if n % 128 != 0."""
    a_max = max(1, min(_MAX_LANE, n) // _LANE)
    best_any = None
    for a in range(a_max, 0, -1):
        L = a * _LANE
        if n % L:
            continue
        rows = n // L
        if best_any is None:
            best_any = L
        if rows % sub == 0 or rows <= sub:
            return L
    return best_any


def _tpu_tuning():
    """Returns (target_block_bytes, vmem_limit_cap, parallel_cores) per generation."""
    kind = ""
    try:
        kind = jax.devices()[0].device_kind.lower()
    except Exception:
        pass
    if "v7" in kind or "7x" in kind:
        # v7x: 64 MiB VMEM/TC, ~3.2 TB/s, 2 TCs/chip. 8 MiB blocks keep the
        # 2x2-buffer footprint at 32 MiB; per-step overhead drops to ~5%.
        return 8 << 20, 40 << 20, 2
    if "v6" in kind or "v5" in kind:
        # v5e/v6e: 128 MiB VMEM, single TC. 16 MiB blocks (footprint 64 MiB) are
        # legal and squeeze out the last few % of roofline.
        return 16 << 20, 72 << 20, 1
    # Unknown generation: conservative values that fit every chip.
    return 8 << 20, 40 << 20, 1


@functools.partial(jax.jit, static_argnames=("cap_value", "donate_input"))
def square_relu_capped(x, cap_value=10.0, *, donate_input=False):
    """Applies min(relu(x)^2, cap_value) elementwise via a Pallas TPU kernel.

    Works for any shape/dtype; the tensor is flattened and re-laid-out into a
    lane-dense 2D slab internally. Jitted so reshapes/pad stay fused. Set
    donate_input=True only when the caller actually donates x at its own jit
    boundary (enables input->output aliasing, saving an HBM allocation).
    """
    orig_shape = x.shape
    dtype = x.dtype
    n = x.size
    if n == 0:
        return x

    itemsize = jnp.dtype(dtype).itemsize
    sub = _sublane(itemsize)
    target_block_bytes, vmem_cap, n_cores = _tpu_tuning()

    flat = x.reshape(-1)

    L = _pick_lane_dim(n, sub)
    padded_n = n
    if L is None:
        # Rare path: total size not a multiple of 128 -> pad up to one native
        # (sub, 128) tile multiple. Fused under jit, so no standalone HBM copy.
        tile_elems = sub * _LANE
        padded_n = _round_up(n, tile_elems)
        flat = jnp.pad(flat, (0, padded_n - n))
        L = _pick_lane_dim(padded_n, sub)

    rows = padded_n // L
    x2 = flat.reshape(rows, L)

    # ---- Block sizing: big, balanced blocks; no ragged sliver at the end. ----
    row_bytes = L * itemsize
    total_bytes = rows * row_bytes
    max_tile_r = max(sub, (target_block_bytes // row_bytes) // sub * sub)

    grid_n = _cdiv(rows, max_tile_r)
    # v7x: make the grid a multiple of the number of TensorCores so
    # dimension_semantics="parallel" gives both TCs equal streaming work.
    if n_cores > 1 and total_bytes >= _MIN_SPLIT_BYTES and rows >= n_cores * sub:
        grid_n = _round_up(grid_n, n_cores)

    if grid_n <= 1:
        tile_r = rows  # full-extent block (always a legal block shape)
    else:
        tile_r = _round_up(_cdiv(rows, grid_n), sub)
        if tile_r >= rows:
            tile_r = rows
    grid_n = _cdiv(rows, tile_r)

    block_bytes = tile_r * row_bytes
    # 2 arrays x 2 pipeline buffers x block + headroom, capped per generation.
    vmem_limit = min(vmem_cap, max(32 << 20, 4 * block_bytes + (8 << 20)))

    kernel = functools.partial(_square_relu_capped_kernel, cap_value=cap_value)

    cost = pl.CostEstimate(
        flops=3 * padded_n,                      # relu + square + min per element
        transcendentals=0,
        bytes_accessed=2 * padded_n * itemsize,  # one read + one write of HBM
    )

    out2 = pl.pallas_call(
        kernel,
        out_shape=jax.ShapeDtypeStruct((rows, L), dtype),
        grid_spec=pltpu.PrefetchScalarGridSpec(
            num_scalar_prefetch=0,
            grid=(grid_n,),
            in_specs=[pl.BlockSpec((tile_r, L), lambda i: (i, 0))],
            out_specs=pl.BlockSpec((tile_r, L), lambda i: (i, 0)),
        ),
        compiler_params=pltpu.CompilerParams(
            dimension_semantics=("parallel",),
            vmem_limit_bytes=vmem_limit,
        ),
        cost_estimate=cost,
        # Alias input->output (saves an HBM output allocation) only when shapes
        # match exactly and the caller opted in to donation.
        input_output_aliases=({0: 0} if (donate_input and padded_n == n) else {}),
    )(x2)

    if padded_n != n:
        return out2.reshape(-1)[:n].reshape(orig_shape)
    return out2.reshape(orig_shape)


if __name__ == "__main__":
    key = jax.random.PRNGKey(0)
    # Small NCHW input consistent with typical use (batch=2, channels=4, 16x16).
    x = jax.random.normal(key, (2, 4, 16, 16), dtype=jnp.float32) * 4.0

    y = square_relu_capped(x, cap_value=10.0)
    y = jax.block_until_ready(y)

    # Reference in plain JAX to sanity-check semantics.
    ref = jnp.minimum(jnp.maximum(x, 0.0) ** 2, 10.0)
    assert y.shape == x.shape and y.dtype == x.dtype
    assert jnp.allclose(y, ref, atol=1e-6, rtol=1e-6)

    print("KERNEL_OK")
</pallas_src>

<mosaic_0001>
module attributes {stable_mosaic.version = 11 : i64} {
  func.func @_square_relu_capped_kernel(%arg0: i32, %arg1: memref<1x2048xf32, #tpu.memory_space<vmem>>, %arg2: memref<1x2048xf32, #tpu.memory_space<vmem>>) attributes {dimension_semantics = [#tpu.dimension_semantics<parallel>], iteration_bounds = array<i64: 1>, scalar_prefetch = 0 : i64, scratch_operands = 0 : i64, tpu.core_type = #tpu.core_type<tc>, window_params = [{transform_indices = @transform_0, window_bounds = array<i64: 1, 2048>}, {transform_indices = @transform_1, window_bounds = array<i64: 1, 2048>}]} {
    %c0 = arith.constant 0 : index
    %c0_0 = arith.constant 0 : index
    %0 = vector.load %arg1[%c0, %c0_0] : memref<1x2048xf32, #tpu.memory_space<vmem>>, vector<1x2048xf32>
    %cst = arith.constant 0.000000e+00 : f32
    %1 = vector.broadcast %cst : f32 to vector<1x2048xf32>
    %2 = arith.maximumf %0, %1 : vector<1x2048xf32>
    %3 = arith.mulf %2, %2 : vector<1x2048xf32>
    %cst_1 = arith.constant 1.000000e+01 : f32
    %4 = vector.broadcast %cst_1 : f32 to vector<1x2048xf32>
    %5 = arith.minimumf %3, %4 : vector<1x2048xf32>
    %c0_2 = arith.constant 0 : index
    %c0_3 = arith.constant 0 : index
    %6 = vector.load %arg2[%c0_2, %c0_3] : memref<1x2048xf32, #tpu.memory_space<vmem>>, vector<1x2048xf32>
    tpu.vector_store %arg2[%c0_2, %c0_3], %5 {strides = array<i32>} : memref<1x2048xf32, #tpu.memory_space<vmem>>, vector<1x2048xf32>,
    return
  }
  func.func @transform_0(%arg0: i32) -> (i32, i32) {
    %c0_i32 = arith.constant 0 : i32
    %c0_i32_0 = arith.constant 0 : i32
    return %arg0, %c0_i32 : i32, i32
  }
  func.func @transform_1(%arg0: i32) -> (i32, i32) {
    %c0_i32 = arith.constant 0 : i32
    %c0_i32_0 = arith.constant 0 : i32
    return %arg0, %c0_i32 : i32, i32
  }
}

</mosaic_0001>

<bundles_post_ra>
// kernel: square_relu_capped.1
= control target key start
LH: loop header
LB: loop body
LE: loop exit
PB: predicated region body
PF: predicated region fallthrough
CT: control target
= control target key end

     0   :  { %s44_s0 = inlined_call_operand.vmem [shape: f32[1,2048], index: 0, kind: input, shape index: {}]   ;;  %s45_s1 = inlined_call_operand.vmem [shape: f32[1,2048], index: 1, kind: output, shape index: {}]  }
   0x1   :  { %v8_v0 = vld [vmem:[%s44_s0] sm:$0xff]  ;;  %v9_v1 = vld [vmem:[%s44_s0 + $0x8] sm:$0xff] }
   0x2   :  { %v10_v2 = vmax.f32 %v8_v0, 0.0  ;;  %v11_v3 = vmax.f32 %v9_v1, 0.0 }
   0x4   :  { %v12_v4 = vmul.f32 %v10_v2, %v10_v2  ;;  %v13_v5 = vmul.f32 %v11_v3, %v11_v3 }
   0x6   :  { %v14_v6 = vmin.f32 %v12_v4, 10.0  ;;  %v15_v7 = vmin.f32 %v13_v5, 10.0 }
   0x8   :  { %16 = vst [vmem:[%s45_s1] sm:$0xff] %v14_v6 }
   0x9   :  { %17 = vst [vmem:[%s45_s1 + $0x8] sm:$0xff] %v15_v7 }

</bundles_post_ra>
